<compile_context>
chip_gen: v5e
topology: v5e:2x2
jax: 0.10.0
libtpu: 0.0.40
codegen_flags: <defaults>
</compile_context>

<pallas_src>
import jax
import jax.numpy as jnp
from jax.experimental import pallas as pl
from jax.experimental.pallas import tpu as pltpu

_LANES = 128          # lane width of a vreg / minor dim of the flattened slab
_TILE_ROWS_MAX = 2048 # 2048*128*4 B = 1 MiB per f32 input per grid step
_NSPLIT = 2           # leading "parallel" axis: 2x on v7x dual-TC, harmless on 1-TC chips
_ROW_ALIGN = 32       # int8 min tile is (32,128); also satisfies the f32 (8,128) rule


def _round_up(a: int, b: int) -> int:
    return ((a + b - 1) // b) * b


def _mse1d_kernel(x_ref, y_ref, w_ref, psum_ref, pcnt_ref):
    k = pl.program_id(1)  # reduction axis (innermost)

    @pl.when(k == 0)
    def _init():
        psum_ref[...] = jnp.zeros_like(psum_ref)
        pcnt_ref[...] = jnp.zeros_like(pcnt_ref)

    x = x_ref[...].astype(jnp.float32)
    y = y_ref[...].astype(jnp.float32)
    w = w_ref[...].astype(jnp.float32)  # 1.0 = valid, 0.0 = masked / padding

    d = x - y
    sq = w * d * d

    tr = sq.shape[0]
    # Fold the (tr, 128) tile onto the vreg-shaped (8, 128) accumulators using
    # only elementwise VPU adds (the reshape groups whole (8,128) tiles, so it
    # is layout-preserving; no per-step cross-lane reduction).
    psum_ref[...] += jnp.sum(sq.reshape(tr // 8, 8, _LANES), axis=0)
    pcnt_ref[...] += jnp.sum(w.reshape(tr // 8, 8, _LANES), axis=0)


def mse1d(x: jax.Array, y: jax.Array, mask: jax.Array) -> jax.Array:
    """Masked MSE over (B, S) arrays. mask: True/1 == excluded."""
    assert x.shape == y.shape, f"shape mismatch {x.shape} vs {y.shape}"
    assert mask.shape == x.shape, "mask shape mismatch"

    n = int(x.size)

    # --- derive a lane-dense, evenly tileable (rows, 128) layout -------------
    rows_needed = -(-n // _LANES)
    rows_per_split_needed = -(-rows_needed // _NSPLIT)
    tile_rows = min(_TILE_ROWS_MAX,
                    _round_up(max(rows_per_split_needed, 1), _ROW_ALIGN))
    rows_per_split = _round_up(rows_per_split_needed, tile_rows)
    rows = _NSPLIT * rows_per_split
    k_steps = rows_per_split // tile_rows
    n_padded = rows * _LANES

    xf = x.reshape(-1).astype(jnp.float32)
    yf = y.reshape(-1).astype(jnp.float32)
    # int8 "valid" weight: 1 byte/elem of HBM traffic instead of 4.
    wf = jnp.logical_not(mask.astype(jnp.bool_)).reshape(-1).astype(jnp.int8)

    pad = n_padded - n
    if pad:
        # Padding carries weight 0, so it contributes nothing to sum or count.
        xf = jnp.pad(xf, (0, pad))
        yf = jnp.pad(yf, (0, pad))
        wf = jnp.pad(wf, (0, pad))

    x2 = xf.reshape(rows, _LANES)
    y2 = yf.reshape(rows, _LANES)
    w2 = wf.reshape(rows, _LANES)

    # --- specs ---------------------------------------------------------------
    in_spec = pl.BlockSpec((tile_rows, _LANES),
                           lambda p, k: (p * k_steps + k, 0))
    out_spec = pl.BlockSpec((8, _LANES), lambda p, k: (p, 0))

    psum, pcnt = pl.pallas_call(
        _mse1d_kernel,
        out_shape=(
            jax.ShapeDtypeStruct((_NSPLIT * 8, _LANES), jnp.float32),
            jax.ShapeDtypeStruct((_NSPLIT * 8, _LANES), jnp.float32),
        ),
        grid_spec=pltpu.PrefetchScalarGridSpec(
            num_scalar_prefetch=0,
            grid=(_NSPLIT, k_steps),
            in_specs=[in_spec, in_spec, in_spec],
            out_specs=[out_spec, out_spec],
        ),
        compiler_params=pltpu.CompilerParams(
            dimension_semantics=("parallel", "arbitrary"),
        ),
    )(x2, y2, w2)

    # Tiny final combine of 2 x (8,128) partials + divide.
    # Note: if every element is masked this is 0/0 -> nan, matching torch.
    return jnp.sum(psum) / jnp.sum(pcnt)


if __name__ == "__main__":
    key = jax.random.PRNGKey(0)
    kx, ky, km = jax.random.split(key, 3)

    B, S = 2, 8
    x = jax.random.normal(kx, (B, S), dtype=jnp.float32)
    y = jax.random.normal(ky, (B, S), dtype=jnp.float32)
    mask = jax.random.bernoulli(km, p=0.3, shape=(B, S))  # True == excluded

    loss = mse1d(x, y, mask)
    jax.block_until_ready(loss)

    # Pure-JAX reference (same semantics as the torch module).
    valid = ~mask
    ref = jnp.sum(jnp.where(valid, (x - y) ** 2, 0.0)) / jnp.sum(valid)
    assert jnp.allclose(loss, ref, rtol=1e-5, atol=1e-6), (loss, ref)

    print("KERNEL_OK")
</pallas_src>

<mosaic_0001>
module attributes {stable_mosaic.version = 11 : i64} {
  func.func @_mse1d_kernel(%arg0: i32, %arg1: i32, %arg2: memref<32x128xf32, #tpu.memory_space<vmem>>, %arg3: memref<32x128xf32, #tpu.memory_space<vmem>>, %arg4: memref<32x128xi8, #tpu.memory_space<vmem>>, %arg5: memref<8x128xf32, #tpu.memory_space<vmem>>, %arg6: memref<8x128xf32, #tpu.memory_space<vmem>>) attributes {dimension_semantics = [#tpu.dimension_semantics<parallel>, #tpu.dimension_semantics<arbitrary>], iteration_bounds = array<i64: 2, 1>, scalar_prefetch = 0 : i64, scratch_operands = 0 : i64, tpu.core_type = #tpu.core_type<tc>, window_params = [{transform_indices = @transform_0, window_bounds = array<i64: 32, 128>}, {transform_indices = @transform_1, window_bounds = array<i64: 32, 128>}, {transform_indices = @transform_2, window_bounds = array<i64: 32, 128>}, {transform_indices = @transform_3, window_bounds = array<i64: 8, 128>}, {transform_indices = @transform_4, window_bounds = array<i64: 8, 128>}]} {
    %c0_i32 = arith.constant 0 : i32
    %0 = arith.cmpi eq, %arg1, %c0_i32 : i32
    %1 = arith.extui %0 : i1 to i32
    %c0_i32_0 = arith.constant 0 : i32
    %2 = arith.cmpi ne, %1, %c0_i32_0 : i32
    scf.if %2 {
      %cst_15 = arith.constant 0.000000e+00 : f32
      %20 = vector.broadcast %cst_15 : f32 to vector<8x128xf32>
      %c0_16 = arith.constant 0 : index
      %c0_17 = arith.constant 0 : index
      %21 = vector.load %arg5[%c0_16, %c0_17] : memref<8x128xf32, #tpu.memory_space<vmem>>, vector<8x128xf32>
      tpu.vector_store %arg5[%c0_16, %c0_17], %20 {strides = array<i32>} : memref<8x128xf32, #tpu.memory_space<vmem>>, vector<8x128xf32>,
      %cst_18 = arith.constant 0.000000e+00 : f32
      %22 = vector.broadcast %cst_18 : f32 to vector<8x128xf32>
      %c0_19 = arith.constant 0 : index
      %c0_20 = arith.constant 0 : index
      %23 = vector.load %arg6[%c0_19, %c0_20] : memref<8x128xf32, #tpu.memory_space<vmem>>, vector<8x128xf32>
      tpu.vector_store %arg6[%c0_19, %c0_20], %22 {strides = array<i32>} : memref<8x128xf32, #tpu.memory_space<vmem>>, vector<8x128xf32>,
    } else {
    }
    %c0 = arith.constant 0 : index
    %c0_1 = arith.constant 0 : index
    %3 = vector.load %arg2[%c0, %c0_1] : memref<32x128xf32, #tpu.memory_space<vmem>>, vector<32x128xf32>
    %c0_2 = arith.constant 0 : index
    %c0_3 = arith.constant 0 : index
    %4 = vector.load %arg3[%c0_2, %c0_3] : memref<32x128xf32, #tpu.memory_space<vmem>>, vector<32x128xf32>
    %c0_4 = arith.constant 0 : index
    %c0_5 = arith.constant 0 : index
    %5 = vector.load %arg4[%c0_4, %c0_5] : memref<32x128xi8, #tpu.memory_space<vmem>>, vector<32x128xi8>
    %6 = arith.sitofp %5 : vector<32x128xi8> to vector<32x128xf32>
    %7 = arith.subf %3, %4 : vector<32x128xf32>
    %8 = arith.mulf %6, %7 : vector<32x128xf32>
    %9 = arith.mulf %8, %7 : vector<32x128xf32>
    %c0_6 = arith.constant 0 : index
    %c0_7 = arith.constant 0 : index
    %10 = vector.load %arg5[%c0_6, %c0_7] : memref<8x128xf32, #tpu.memory_space<vmem>>, vector<8x128xf32>
    %11 = vector.shape_cast %9 : vector<32x128xf32> to vector<4x8x128xf32>
    %cst = arith.constant dense<0.000000e+00> : vector<8x128xf32>
    %12 = vector.multi_reduction <add>, %11, %cst [0] : vector<4x8x128xf32> to vector<8x128xf32>
    %13 = arith.addf %10, %12 : vector<8x128xf32>
    %c0_8 = arith.constant 0 : index
    %c0_9 = arith.constant 0 : index
    %14 = vector.load %arg5[%c0_8, %c0_9] : memref<8x128xf32, #tpu.memory_space<vmem>>, vector<8x128xf32>
    tpu.vector_store %arg5[%c0_8, %c0_9], %13 {strides = array<i32>} : memref<8x128xf32, #tpu.memory_space<vmem>>, vector<8x128xf32>,
    %c0_10 = arith.constant 0 : index
    %c0_11 = arith.constant 0 : index
    %15 = vector.load %arg6[%c0_10, %c0_11] : memref<8x128xf32, #tpu.memory_space<vmem>>, vector<8x128xf32>
    %16 = vector.shape_cast %6 : vector<32x128xf32> to vector<4x8x128xf32>
    %cst_12 = arith.constant dense<0.000000e+00> : vector<8x128xf32>
    %17 = vector.multi_reduction <add>, %16, %cst_12 [0] : vector<4x8x128xf32> to vector<8x128xf32>
    %18 = arith.addf %15, %17 : vector<8x128xf32>
    %c0_13 = arith.constant 0 : index
    %c0_14 = arith.constant 0 : index
    %19 = vector.load %arg6[%c0_13, %c0_14] : memref<8x128xf32, #tpu.memory_space<vmem>>, vector<8x128xf32>
    tpu.vector_store %arg6[%c0_13, %c0_14], %18 {strides = array<i32>} : memref<8x128xf32, #tpu.memory_space<vmem>>, vector<8x128xf32>,
    return
  }
  func.func @transform_0(%arg0: i32, %arg1: i32) -> (i32, i32) {
    %c1_i32 = arith.constant 1 : i32
    %0 = arith.muli %arg0, %c1_i32 : i32
    %1 = arith.addi %0, %arg1 : i32
    %c0_i32 = arith.constant 0 : i32
    %c0_i32_0 = arith.constant 0 : i32
    return %1, %c0_i32 : i32, i32
  }
  func.func @transform_1(%arg0: i32, %arg1: i32) -> (i32, i32) {
    %c1_i32 = arith.constant 1 : i32
    %0 = arith.muli %arg0, %c1_i32 : i32
    %1 = arith.addi %0, %arg1 : i32
    %c0_i32 = arith.constant 0 : i32
    %c0_i32_0 = arith.constant 0 : i32
    return %1, %c0_i32 : i32, i32
  }
  func.func @transform_2(%arg0: i32, %arg1: i32) -> (i32, i32) {
    %c1_i32 = arith.constant 1 : i32
    %0 = arith.muli %arg0, %c1_i32 : i32
    %1 = arith.addi %0, %arg1 : i32
    %c0_i32 = arith.constant 0 : i32
    %c0_i32_0 = arith.constant 0 : i32
    return %1, %c0_i32 : i32, i32
  }
  func.func @transform_3(%arg0: i32, %arg1: i32) -> (i32, i32) {
    %c0_i32 = arith.constant 0 : i32
    %c0_i32_0 = arith.constant 0 : i32
    return %arg0, %c0_i32 : i32, i32
  }
  func.func @transform_4(%arg0: i32, %arg1: i32) -> (i32, i32) {
    %c0_i32 = arith.constant 0 : i32
    %c0_i32_0 = arith.constant 0 : i32
    return %arg0, %c0_i32 : i32, i32
  }
}

</mosaic_0001>

<bundles_post_ra>
// kernel: tpu_custom_call.1
= control target key start
LH: loop header
LB: loop body
LE: loop exit
PB: predicated region body
PF: predicated region fallthrough
CT: control target
= control target key end

     0   :  { %s1102_s0 = inlined_call_operand.hbm [shape: f32[64,128], index: 0, kind: input, shape index: {}]   ;;  %s1103_s1 = inlined_call_operand.hbm [shape: f32[64,128], index: 1, kind: input, shape index: {}]   ;;  %s1104_s2 = inlined_call_operand.hbm [shape: s8[64,128], index: 2, kind: input, shape index: {}]   ;;  %s1105_s3 = inlined_call_operand.hbm [shape: f32[16,128], index: 3, kind: output, shape index: {0}]   ;;  %s1106_s4 = inlined_call_operand.hbm [shape: f32[16,128], index: 4, kind: output, shape index: {1}]  }
   0x1   :  { %1116 = sst [smem:[#allocation22_spill]] %s1103_s1 }
   0x2   :  { %1117 = sst [smem:[#allocation23_spill]] %s1105_s3 }
   0x3   :  { %10 = vsyncpa [#allocation3], 0 }
   0x4   :  { %12 = vsyncpa [#allocation3 + $0x1], 0 }
   0x5   :  { %13 = vsyncpa [#allocation6], 0 }
   0x6   :  { %15 = vsyncpa [#allocation6 + $0x1], 0 }
   0x7   :  { %16 = vsyncpa [#allocation4], 0 }
   0x8   :  { %18 = vsyncpa [#allocation4 + $0x1], 0 }
   0x9   :  { %19 = vsyncpa [#allocation10], 0 }
   0xa   :  { %21 = vsyncpa [#allocation10 + $0x1], 0  ;;  %s915_s15 = smov 0   ;;  %s917_s16 = smov 0  }
   0xb   :  { %s919_s17 = smov 0   ;;  %s921_s18 = smov 0  }
   0xc   :  { %s923_s19 = smov 0   ;;  %s925_s20 = smov 0  }
   0xd LB: > { %1118 = sst [smem:[#allocation15_spill]] %s866_s15  ;;  %s946_s21 = sadd.s32 4294967295, %s886_s20   ;;  %s886_s20 = sphi %s925_s20, %s27_s20   ;;  %s882_s19 = sphi %s923_s19, %s1143_s19   ;;  %s878_s18 = sphi %s921_s18, %s1142_s18   ;;  %s874_s17 = sphi %s919_s17, %s1138_s17   ;;  %s870_s16 = sphi %s917_s16, %s1141_s16   ;;  %s866_s15 = sphi %s915_s15, %s1140_s15  }
   0xe   : > { %1119 = sst [smem:[#allocation16_spill]] %s874_s17  ;;  %s573_s22 = sadd.s32 4294967294, %s886_s20  }
   0xf   : > { %1120 = sst [smem:[#allocation17_spill]] %s886_s20  ;;  %s39_s23 = sadd.s32 1, %s882_s19 }
  0x10   : > { %s48_s24 = sadd.s32 1, %s874_s17  ;;  %p41_p0 = scmp.ge.s32.totalorder %s39_s23, 2 }
  0x11   : > { %p55_p1 = scmp.ne.s32.totalorder %s874_s17, %s870_s16  ;;  %p56_p2 = scmp.eq.s32.totalorder %s886_s20, 0 }
  0x12   : > { %p61_p3 = scmp.ne.s32.totalorder %s870_s16, %s866_s15  ;;  %s1145_s23 = smov (%p41_p0, %s39_s23), 0 }
  0x13   : > { %1121 = sst [smem:[#allocation18_spill]] %s1145_s23  ;;  %p958_p4 = por %p56_p2, %p55_p1 }
  0x14   : > { %p62_p5 = scmp.eq.s32.totalorder %s946_s21, 0  ;;  %s45_s26 = ssub.s32 %s882_s19, %s1145_s23 }
  0x15   : > { %p141_p6 = scmp.eq.s32.totalorder %s946_s21, 1  ;;  %p46_p7 = scmp.eq.s32.totalorder %s45_s26, 0 }
  0x16   : > { %p966_p8 = por %p62_p5, %p61_p3  ;;  %p147_p10 = scmp.eq.s32.totalorder %s573_s22, 1 }
  0x17   : > { %p970_p9 = por %p141_p6, %p55_p1  ;;  %p575_p12 = scmp.ge.s32.totalorder %s886_s20, 2 }
  0x18   : > { %s975_s29 = scalar_select %p46_p7, %s874_s17, %s48_s24  }
  0x19   : > { %s1124_s28 = scalar_select %p970_p9, 1, 0 }
  0x1a   : > { %1126 = sst [smem:[#allocation20_spill]] %s975_s29  ;;  %p977_p11 = por %p147_p10, %p61_p3 }
  0x1b   : > { %1125 = sst [smem:[#allocation19_spill]] %s1124_s28  ;;  %p625_p13 = scmp.lt.s32.totalorder %s886_s20, 2 }
  0x1c   : > { %s1127_s30 = scalar_select %p977_p11, 1, 0 }
  0x1d   : > { %s984_s5 = sand.u32 1, %s874_s17   ;;  %s596_s7 = sshll.u32 %s882_s19, 5 }
  0x1e   : > { %1128 = sst [smem:[#allocation21_spill]] %s1127_s30  ;;  %s576_s6 = sshll.u32 %s984_s5, 5 }
  0x1f   : > { %p990_p0 = pnand %p625_p13, %p958_p4  ;;  %s216_s9 = sand.u32 1, %s886_s20  }
  0x20   : > { %s1130_s1 = sld [smem:[#allocation22_spill]]  ;;  %s220_s14 = scalar_lea.vmem [#allocation5], %s576_s6 }
  0x21   : > { %s229_s22 = sshll.u32 %s220_s14, 4  ;;  %s217_s24 = scalar_lea.sflag [#allocation6], %s216_s9  ;;  %s230_s22 = int_to_ptr.vmem [resolvable:$true] %s229_s22 }
  0x22   : > { %s888_s25 = smov 128   ;;  %s889_s26 = smov 8  }
  0x23   : > { %p584_p1 = scmp.ge.s32.totalorder %s886_s20, 1  ;;  %p257_p2 = scmp.lt.s32.totalorder %s886_s20, 3 }
  0x24   : > { %s194_s9 = scalar_lea.sflag [#allocation3], %s984_s5 }
  0x25   : > { %p1002_p3 = pnand %p584_p1, %p257_p2 }
  0x26   : > { %s226_s12 = scalar_lea.hbm %s1130_s1, %s596_s7  ;;  %s197_s1 = scalar_lea.vmem [#allocation2], %s576_s6 }
  0x27   : > { %s227_s13 = sshll.u32 %s226_s12, 4  ;;  %s203_s12 = scalar_lea.hbm %s1102_s0, %s596_s7  ;;  %s228_s13 = int_to_ptr.hbm [resolvable:$true] %s227_s13 }
  0x28   : > { %614 = dma.hbm_to_vmem [thread:$0]  (!%p990_p0), %s228_s13, 512, %s230_s22, %s217_s24, %s888_s25, %s888_s25, %s889_s26  }
  0x29   : > { %s204_s14 = sshll.u32 %s203_s12, 4  ;;  %s206_s29 = sshll.u32 %s197_s1, 4  ;;  %s205_s14 = int_to_ptr.hbm [resolvable:$true] %s204_s14  ;;  %s207_s29 = int_to_ptr.vmem [resolvable:$true] %s206_s29 }
  0x2a   : > { %611 = dma.hbm_to_vmem [thread:$0]  (!%p990_p0), %s205_s14, 512, %s207_s29, %s194_s9, %s888_s25, %s888_s25, %s889_s26  }
  0x2b   : > { %s582_s13 = sshll.u32 %s984_s5, 3  ;;  %s583_s22 = sshll.u32 %s882_s19, 3 }
  0x2c   : > { %s248_s30 = scalar_lea.hbm %s1104_s2, %s583_s22  ;;  %s243_s28 = scalar_lea.vmem [#allocation7], %s582_s13 }
  0x2d   : > { %s250_s15 = sshll.u32 %s248_s30, 4  ;;  %s252_s3 = sshll.u32 %s243_s28, 4  ;;  %s251_s15 = int_to_ptr.hbm [resolvable:$true] %s250_s15  ;;  %s253_s3 = int_to_ptr.vmem [resolvable:$true] %s252_s3 }
  0x2e   : > { %617 = dma.hbm_to_vmem [thread:$0]  (!%p990_p0), %s251_s15, 128, %s253_s3, %s217_s24  }
  0x2f   : > { %261 = sbr.rel (%p1002_p3) target bundleno = 86 (0x56), region = 32  ;;  %s1022_s1 = sand.u32 (!%p1002_p3), 1, %s870_s16  }
  0x30   : > { %s585_s29 = sshll.u32 (!%p1002_p3), %s1022_s1, 5  ;;  %s264_s5 = scalar_lea.sflag (!%p1002_p3), [#allocation3], %s1022_s1 }
  0x31   : > { %s267_s17 = scalar_lea.vmem (!%p1002_p3), [#allocation2], %s585_s29 }
  0x34   : > { %849 = dma.done.wait (%p966_p8), %s264_s5, 512  }
  0x35   : > { %851 = vsyncadd (%p966_p8), %s264_s5, 4294966784  ;;  %s273_s3 = sand.u32 1, %s946_s21   ;;  %s277_s20 = scalar_lea.vmem [#allocation5], %s585_s29 }
  0x36   : > { %s274_s15 = scalar_lea.sflag [#allocation6], %s273_s3 }
  0x37   : > { %853 = dma.done.wait (%p966_p8), %s274_s15, 640  }
  0x38   : > { %855 = vsyncadd (%p966_p8), %s274_s15, 4294966656  ;;  %s1036_s23 = sshll.u32 %s1022_s1, 3  ;;  %v339_v0 = vld [vmem:[%s267_s17] sm:$0xff]  ;;  %v340_v1 = vld [vmem:[%s267_s17 + $0x8] sm:$0xff]  ;;  %s592_s21 = sshll.u32 %s878_s18, 3 }
  0x39   : > { %v343_v2 = vld [vmem:[%s277_s20] sm:$0xff]  ;;  %v344_v3 = vld [vmem:[%s277_s20 + $0x8] sm:$0xff]  ;;  %s287_s28 = scalar_lea.vmem [#allocation7], %s1036_s23  ;;  %v341_v6 = vld [vmem:[%s267_s17 + $0x10] sm:$0xff]  ;;  %s410_s6 = scalar_lea.hbm %s1106_s4, %s592_s21 }
  0x3a   : > { %v347_v4 = vld [vmem:[%s287_s28] sm:$0xff]  ;;  %v356_v5 = vsub.f32 %v339_v0, %v343_v2  ;;  %v342_v11 = vld [vmem:[%s267_s17 + $0x18] sm:$0xff]  ;;  %v345_v12 = vld [vmem:[%s277_s20 + $0x10] sm:$0xff]  ;;  %v357_v14 = vsub.f32 %v340_v1, %v344_v3  ;;  %s1132_s24 = sld [smem:[#allocation23_spill]]  ;;  %s327_s18 = scalar_lea.vmem [#allocation9], %s1036_s23 }
  0x3b   : > { %v348_v7 = vunpack.c.0.s8 %v347_v4  ;;  %v349_v8 = vunpack.c.1.s8 %v347_v4  ;;  %v350_v9 = vunpack.c.2.s8 %v347_v4  ;;  %v351_v10 = vunpack.c.3.s8 %v347_v4  ;;  %v346_v13 = vld [vmem:[%s277_s20 + $0x18] sm:$0xff]  ;;  %s412_s26 = sshll.u32 %s327_s18, 4  ;;  %s414_s10 = sshll.u32 %s410_s6, 4  ;;  %s413_s26 = int_to_ptr.vmem [resolvable:$true] %s412_s26  ;;  %s415_s10 = int_to_ptr.hbm [resolvable:$true] %s414_s10 }
  0x3c   : > { %v358_v15 = vsub.f32 %v341_v6, %v345_v12  ;;  %v359_v16 = vsub.f32 %v342_v11, %v346_v13  ;;  %s320_s12 = scalar_lea.vmem [#allocation8], %s1036_s23  ;;  %s386_s13 = scalar_lea.sflag [#allocation10], %s1022_s1 }
  0x3d   : > { %v352_v17 = vcvt.s32.f32 %v348_v7  ;;  %v353_v18 = vcvt.s32.f32 %v349_v8  ;;  %v354_v19 = vcvt.s32.f32 %v350_v9  ;;  %v355_v20 = vcvt.s32.f32 %v351_v10  ;;  %s1048_s14 = sshll.u32 %s320_s12, 4  ;;  %s782_s22 = sshra.s32 %s415_s10, 4  ;;  %s399_s14 = int_to_ptr.vmem [resolvable:$true] %s1048_s14  ;;  %s783_s22 = int_to_ptr.hbm [resolvable:$true] %s782_s22 }
  0x3e   : > { %s784_s29 = scalar_lea.hbm %s783_s22, 8  ;;  %s788_s3 = scalar_lea.hbm %s1106_s4, 16 }
  0x3f   : > { %v360_v21 = vmul.f32 %v356_v5, %v352_v17  ;;  %v361_v22 = vmul.f32 %v357_v14, %v353_v18  ;;  %v362_v23 = vmul.f32 %v358_v15, %v354_v19  ;;  %v363_v24 = vmul.f32 %v359_v16, %v355_v20  ;;  %p785_p4 = scmp.ne.s32.totalorder %s783_s22, %s784_s29  ;;  %p789_p7 = scmp.lt.s32.totalorder %s783_s22, %s1106_s4 }
  0x40   : > { %v375_v25 = vadd.f32 %v353_v18, %v352_v17  ;;  %s396_s25 = scalar_lea.hbm %s1132_s24, %s592_s21  ;;  %p790_p8 = scmp.lt.s32.totalorder %s788_s3, %s784_s29 }
  0x41   : > { %v364_v26 = vmul.f32 %v360_v21, %v356_v5  ;;  %v365_v27 = vmul.f32 %v361_v22, %v357_v14  ;;  %v366_v28 = vmul.f32 %v362_v23, %v358_v15  ;;  %v367_v30 = vmul.f32 %v363_v24, %v359_v16  ;;  %s400_s9 = sshll.u32 %s396_s25, 4  ;;  %p786_p5 = pnand %p785_p4, %p970_p9  ;;  %s1051_s9 = int_to_ptr.hbm [resolvable:$true] %s400_s9 }
  0x42   : > { %v376_v29 = vadd.f32 %v375_v25, %v354_v19  ;;  %p791_p10 = por %p790_p8, %p789_p7 }
  0x43   : > { %v369_v31 = vadd.f32 %v365_v27, %v364_v26  ;;  %p787_p6 = pneg %p786_p5 }
  0x44   : > { %v377_v32 = vadd.f32 %v376_v29, %v355_v20 }
  0x45   : > { %v370_v33 = vadd.f32 %v369_v31, %v366_v28  ;;  %p792_p13 = pnand %p791_p10, %p787_p6 }
  0x46   : > { %379 = vst [vmem:[%s327_s18] sm:$0xff] %v377_v32 }
  0x47   : > { %v371_v34 = vadd.f32 %v370_v33, %v367_v30 }
  0x48   : > { %795 = shalt.err (!%p792_p13)
}
  0x49   : > { %605 = dma.vmem_to_hbm [thread:$0]  (%p970_p9), %s413_s26, 128, %s415_s10, %s386_s13   ;;  %373 = vst [vmem:[%s320_s12] sm:$0xff] %v371_v34 }
  0x4a   : > { %s381_s23 = scalar_lea.sflag [#allocation4], %s1022_s1  ;;  %s810_s28 = sshra.s32 %s1051_s9, 4  ;;  %s811_s28 = int_to_ptr.hbm [resolvable:$true] %s810_s28 }
  0x4b   : > { %s812_s21 = scalar_lea.hbm %s811_s28, 8  ;;  %s816_s6 = scalar_lea.hbm %s1132_s24, 16 }
  0x4c   : > { %p813_p0 = scmp.ne.s32.totalorder %s811_s28, %s812_s21  ;;  %p817_p3 = scmp.lt.s32.totalorder %s811_s28, %s1132_s24 }
  0x4d   : > { %p818_p4 = scmp.lt.s32.totalorder %s816_s6, %s812_s21 }
  0x4e   : > { %p814_p1 = pnand %p813_p0, %p970_p9 }
  0x4f   : > { %p819_p5 = por %p818_p4, %p817_p3 }
  0x50   : > { %p815_p2 = pneg %p814_p1 }
  0x52   : > { %p820_p6 = pnand %p819_p5, %p815_p2 }
  0x54   : > { %823 = shalt.err (!%p820_p6)
}
  0x55   : > { %604 = dma.vmem_to_hbm [thread:$0]  (%p970_p9), %s399_s14, 128, %s1051_s9, %s381_s23  }
  0x56 PF: > { %s1134_s1 = sld [smem:[#allocation15_spill]]  ;;  %p619_p7 = pnand %p575_p12, %p977_p11 }
  0x57   : > { %s1136_s18 = sld [smem:[#allocation17_spill]] }
  0x58   : > { %p620_p8 = pneg %p619_p7 }
  0x5c   : > { %s426_s26 = sand.u32 1, %s1134_s1  }
  0x5d   : > { %s427_s10 = scalar_lea.sflag [#allocation4], %s426_s26 }
  0x5e   : > { %857 = dma.done.wait (%p620_p8), %s427_s10, 128  }
  0x5f   : > { %859 = vsyncadd (%p620_p8), %s427_s10, 4294967168  ;;  %s437_s12 = scalar_lea.sflag [#allocation10], %s426_s26 }
  0x60   : > { %861 = dma.done.wait (%p620_p8), %s437_s12, 128  }
  0x61   : > { %863 = vsyncadd (%p620_p8), %s437_s12, 4294967168  ;;  %s27_s20 = sadd.s32 1, %s1136_s18   ;;  %s1137_s11 = sld [smem:[#allocation16_spill]] }
  0x62   : > { %p24_p10 = scmp.ge.s32.totalorder %s27_s20, 4   ;;  %s1138_s17 = sld [smem:[#allocation20_spill]] }
  0x63   : > { %s1139_s14 = sld [smem:[#allocation18_spill]]  ;;  %s1140_s15 = smov %s870_s16 }
  0x64   : > { %s1142_s18 = smov %s882_s19 }
  0x65   :  { %26 = sbr.rel (!%p24_p10) target bundleno = 13 (0xd), region = 122 }
  0x67   : > { %s1141_s16 = smov %s1137_s11 }
  0x69   : > { %s1143_s19 = smov %s1139_s14 }
  0x6a   :  { %443 = vsyncpa [#allocation3], 1 }
  0x6b   :  { %445 = vsyncpa [#allocation3 + $0x1], 1 }
  0x6c   :  { %446 = vsyncpa [#allocation6], 1 }
  0x6d   :  { %448 = vsyncpa [#allocation6 + $0x1], 1 }
  0x6e   :  { %449 = vsyncpa [#allocation4], 1 }
  0x6f   :  { %451 = vsyncpa [#allocation4 + $0x1], 1 }
  0x70   :  { %452 = vsyncpa [#allocation10], 1 }
  0x71   :  { %454 = vsyncpa [#allocation10 + $0x1], 1 }

</bundles_post_ra>
